<compile_context>
chip_gen: v6e
topology: v6e:2x2x1
jax: 0.10.0
libtpu: 0.0.40
codegen_flags: <defaults>
</compile_context>

<pallas_src>
import functools
import math

import jax
import jax.numpy as jnp
from jax import lax
from jax.experimental import pallas as pl
from jax.experimental.pallas import tpu as pltpu


LANE = 128


def _round_up(x, m):
    return (x + m - 1) // m * m


def _tpu_vmem_capacity_bytes():
    try:
        info = pltpu.get_tpu_info()
        cap = getattr(info, "vmem_capacity_bytes", None)
        if cap:
            return int(cap)
    except Exception:
        pass
    return 64 * 1024 * 1024  # conservative: v7x per-TensorCore VMEM


_VMEM_CAP_BYTES = _tpu_vmem_capacity_bytes()
# v5e/v6e (128 MiB) -> ~108 MiB budget; v7x (64 MiB) -> ~54 MiB budget.
_VMEM_LIMIT_BYTES = max(48 << 20, min(int(_VMEM_CAP_BYTES * 0.85), 112 << 20))


# ----------------------------- in-kernel helpers -----------------------------

def _layernorm(x, g, b, d_real, eps=1e-5):
    # x: (R, Dp) f32 with exactly-zero padding in columns >= d_real.
    # Two-pass variance on the REAL feature count; the zero-padded lanes each
    # contribute (-mu)^2 to sum((x-mu)^2), which is subtracted exactly.
    dp = x.shape[-1]
    inv_d = 1.0 / float(d_real)
    mu = jnp.sum(x, axis=-1, keepdims=True) * inv_d
    c = x - mu
    var = (jnp.sum(c * c, axis=-1, keepdims=True)
           - float(dp - d_real) * mu * mu) * inv_d
    # padded output lanes stay 0 because gamma/beta are zero there.
    return c * lax.rsqrt(var + eps) * g + b


def _gelu_exact(x):
    # PyTorch nn.GELU() default is the exact erf formulation.
    return 0.5 * x * (1.0 + lax.erf(x * (1.0 / math.sqrt(2.0))))


def _softmax_lastdim(s):
    m = jnp.max(s, axis=-1, keepdims=True)
    e = jnp.exp(s - m)
    return e * pl.reciprocal(jnp.sum(e, axis=-1, keepdims=True), approx=True)


# --------------------------------- kernels -----------------------------------

def embed_kernel(xp_ref, w1_ref, pos_ref, g_ref, b_ref, o_ref, *, d_real):
    """patch linear (conv1, no bias) + positional embedding + ln_pre."""
    h = jnp.dot(xp_ref[0], w1_ref[...], preferred_element_type=jnp.float32)
    h = h + pos_ref[...]
    o_ref[0] = _layernorm(h, g_ref[0], b_ref[0], d_real).astype(o_ref.dtype)


def resblock_kernel(x_ref,
                    ln1g_ref, ln1b_ref,
                    wqkv_ref, bqkv_ref, wo_ref, bo_ref,
                    ln2g_ref, ln2b_ref,
                    wfc_ref, bfc_ref, wpr_ref, bpr_ref,
                    lnpg_ref, lnpb_ref,
                    o_ref,
                    xa_sc, h2_sc, acc_sc, qkv_sc,
                    *, n_head, d_real, apply_ln_post):
    """Pre-LN residual attention block, grid = (batch_block, Dm_chunk):
       k==0      : attention for all TB sequences + residual, init MLP accumulator
       every k   : streamed MLP chunk  acc += gelu(h2 @ Wfc_k + bfc_k) @ Wproj_k
                   (slab reused across the TB sequences of this batch block)
       k==last   : out = (x+attn) + acc + bproj  [+ optional fused ln_post]."""
    k = pl.program_id(1)
    nk = pl.num_programs(1)
    TB, S, Dp = x_ref.shape
    hdp = wo_ref.shape[1]          # 128-lane padded per-head dim
    Hp = n_head * hdp              # padded qkv width per q/k/v part

    @pl.when(k == 0)
    def _attention_and_init():
        acc_sc[...] = jnp.zeros_like(acc_sc)

        def seq_body(tb, _):
            r0 = pl.multiple_of(tb * S, 8)
            xs = x_ref[tb].astype(jnp.float32)                           # (S, Dp)
            h1 = _layernorm(xs, ln1g_ref[0], ln1b_ref[0], d_real)
            # 1/sqrt(hd) is folded into Wq/bq in the wrapper; bias layout matches
            # the per-head padded weight columns.
            qkv = jnp.dot(h1.astype(jnp.bfloat16), wqkv_ref[...],
                          preferred_element_type=jnp.float32) + bqkv_ref[0]
            qkv_sc[...] = qkv.astype(jnp.bfloat16)                       # (S, 3*Hp)

            def head_body(hh, attn):
                lo = pl.multiple_of(hh * hdp, hdp)                       # lane aligned
                q = qkv_sc[:, pl.ds(lo, hdp)]
                kk = qkv_sc[:, pl.ds(Hp + lo, hdp)]
                vv = qkv_sc[:, pl.ds(2 * Hp + lo, hdp)]
                # QK^T without explicit transpose; zero-padded head lanes are exact.
                s = lax.dot_general(q, kk, (((1,), (1,)), ((), ())),
                                    preferred_element_type=jnp.float32)
                p = _softmax_lastdim(s).astype(jnp.bfloat16)             # (S, S)
                ho = jnp.dot(p, vv, preferred_element_type=jnp.float32)  # (S, hdp)
                # Fused per-head output projection -> no concat / relayout.
                return attn + jnp.dot(ho.astype(jnp.bfloat16), wo_ref[hh],
                                      preferred_element_type=jnp.float32)

            attn = lax.fori_loop(0, n_head, head_body,
                                 jnp.zeros((S, Dp), jnp.float32))
            xa = xs + attn + bo_ref[0]
            xa_sc[pl.ds(r0, S), :] = xa
            h2_sc[pl.ds(r0, S), :] = _layernorm(
                xa, ln2g_ref[0], ln2b_ref[0], d_real).astype(jnp.bfloat16)
            return 0

        lax.fori_loop(0, TB, seq_body, 0)

    # Streamed MLP chunk over the hidden (Dm) dimension; the (Dp, tdm)/(tdm, Dp)
    # weight slabs arrive via the BlockSpec pipeline and are reused for all TB*S rows.
    mid = jnp.dot(h2_sc[...], wfc_ref[...],
                  preferred_element_type=jnp.float32) + bfc_ref[0]       # (TB*S, tdm)
    mid = _gelu_exact(mid)
    acc_sc[...] += jnp.dot(mid.astype(jnp.bfloat16), wpr_ref[...],
                           preferred_element_type=jnp.float32)

    @pl.when(k == nk - 1)
    def _finalize():
        y = xa_sc[...] + acc_sc[...] + bpr_ref[0]
        if apply_ln_post:                        # static Python flag (last layer only)
            y = _layernorm(y, lnpg_ref[0], lnpb_ref[0], d_real)
        o_ref[...] = y.reshape(TB, S, Dp).astype(o_ref.dtype)


# ------------------------------ pallas wrappers -------------------------------

def embed_call(xp, w1, pos, g, b, d_real):
    B, S, Pp = xp.shape
    Dp = w1.shape[1]
    kern = functools.partial(embed_kernel, d_real=d_real)
    return pl.pallas_call(
        kern,
        out_shape=jax.ShapeDtypeStruct((B, S, Dp), jnp.bfloat16),
        grid=(B,),
        in_specs=[
            pl.BlockSpec((1, S, Pp), lambda i: (i, 0, 0)),
            pl.BlockSpec((Pp, Dp), lambda i: (0, 0)),
            pl.BlockSpec((S, Dp), lambda i: (0, 0)),
            pl.BlockSpec((1, Dp), lambda i: (0, 0)),
            pl.BlockSpec((1, Dp), lambda i: (0, 0)),
        ],
        out_specs=pl.BlockSpec((1, S, Dp), lambda i: (i, 0, 0)),
        compiler_params=pltpu.CompilerParams(
            dimension_semantics=("parallel",),
            vmem_limit_bytes=_VMEM_LIMIT_BYTES),
    )(xp, w1, pos, g, b)


def resblock_call(x, p, *, n_head, d_real, tdm, tb,
                  ln_post_g, ln_post_b, apply_ln_post):
    B, S, Dp = x.shape
    hdp = p["wo"].shape[1]
    Hp = n_head * hdp
    Dmp = p["wfc"].shape[1]
    nk = Dmp // tdm
    nb = B // tb
    kern = functools.partial(resblock_kernel, n_head=n_head, d_real=d_real,
                             apply_ln_post=apply_ln_post)

    def _const(shape):
        n = len(shape)
        return pl.BlockSpec(shape, lambda b, k, _n=n: (0,) * _n)

    # TODO(synk): for very large D on v7x, also stream wqkv along its 3*Hp output dim
    # (same slab pattern) and single-buffer the grid-invariant inputs to reclaim VMEM.
    return pl.pallas_call(
        kern,
        out_shape=jax.ShapeDtypeStruct((B, S, Dp), jnp.bfloat16),
        grid=(nb, nk),
        in_specs=[
            pl.BlockSpec((tb, S, Dp), lambda b, k: (b, 0, 0)),     # x (TB sequences)
            _const((1, Dp)), _const((1, Dp)),                      # ln_1
            _const((Dp, 3 * Hp)), _const((1, 3 * Hp)),             # in_proj (per-head padded)
            _const((n_head, hdp, Dp)), _const((1, Dp)),            # out_proj (per-head slabs)
            _const((1, Dp)), _const((1, Dp)),                      # ln_2
            pl.BlockSpec((Dp, tdm), lambda b, k: (0, k)),          # c_fc weight slab
            pl.BlockSpec((1, tdm), lambda b, k: (0, k)),           # c_fc bias slab
            pl.BlockSpec((tdm, Dp), lambda b, k: (k, 0)),          # c_proj weight slab
            _const((1, Dp)),                                       # c_proj bias
            _const((1, Dp)), _const((1, Dp)),                      # ln_post (last layer)
        ],
        out_specs=pl.BlockSpec((tb, S, Dp), lambda b, k: (b, 0, 0)),
        scratch_shapes=[
            pltpu.VMEM((tb * S, Dp), jnp.float32),    # x + attn (residual state)
            pltpu.VMEM((tb * S, Dp), jnp.bfloat16),   # ln_2(x + attn), matmul input
            pltpu.VMEM((tb * S, Dp), jnp.float32),    # MLP accumulator
            pltpu.VMEM((S, 3 * Hp), jnp.bfloat16),    # per-sequence qkv (bf16, cast once)
        ],
        compiler_params=pltpu.CompilerParams(
            dimension_semantics=("parallel", "arbitrary"),
            vmem_limit_bytes=_VMEM_LIMIT_BYTES),
    )(x,
      p["ln1_g"], p["ln1_b"],
      p["wqkv"], p["bqkv"], p["wo"], p["bo"],
      p["ln2_g"], p["ln2_b"],
      p["wfc"], p["bfc"], p["wproj"], p["bproj"],
      ln_post_g, ln_post_b)


# ------------------------------- model wrapper --------------------------------

class TransformerEncoderPallas:
    """JAX/Pallas re-implementation of TransformerEncoder.forward (num_frames=1,
    ln_pre=True, ln_post=True, mask_type='none', preln blocks, eval mode)."""

    def __init__(self, image_size, patch_size, width, layers, heads, mlp_ratio, key):
        assert layers >= 1
        self.image_size = (image_size, image_size)
        self.patch_size = (patch_size, patch_size)
        self.grid_size = (image_size // patch_size, image_size // patch_size)
        self.seq_len = self.grid_size[0] * self.grid_size[1]
        self.width = width
        self.layers = layers
        self.heads = heads

        D = width
        Dp = _round_up(D, LANE)
        assert D % heads == 0, "width must be divisible by heads (PyTorch MHA requirement)"
        hd = D // heads
        hdp = _round_up(hd, LANE)                       # 128-lane padded per-head dim
        Hp = heads * hdp
        Dm = int(width * mlp_ratio)
        tdm_cap = 1024 if _VMEM_LIMIT_BYTES >= (96 << 20) else 512
        tdm = min(_round_up(Dm, LANE), tdm_cap)         # MLP hidden-dim slab width
        Dmp = _round_up(Dm, tdm)
        P = 3 * patch_size * patch_size
        Pp = _round_up(P, LANE)
        S = self.seq_len
        self.D, self.Dp, self.hd, self.hdp, self.Hp = D, Dp, hd, hdp, Hp
        self.Dm, self.Dmp, self.tdm, self.P, self.Pp = Dm, Dmp, tdm, P, Pp
        # TODO(synk): sequence padding + key masking for S not a multiple of 8/128
        # (e.g. 197 with CLS) and a flash-style KV loop for S >= 512 are not wired.
        # TODO(synk): 'causal' / 'block-causal' attention masks not wired; the module
        # default mask_type='none' is reproduced (no mask applied).

        keys = jax.random.split(key, 2 + 4 * layers)

        def normal(k, shape):
            return 0.02 * jax.random.normal(k, shape, dtype=jnp.float32)

        def pad2(a, rows, cols):
            return jnp.zeros((rows, cols), jnp.float32).at[:a.shape[0], :a.shape[1]].set(a)

        def pad_vec(v, cols):
            return jnp.zeros((1, cols), jnp.float32).at[0, :v.shape[0]].set(v)

        # conv1 is nn.Linear(P, D, bias=False) since ln_pre=True; stored transposed (x @ W).
        w1 = normal(keys[0], (D, P))
        self.w1 = pad2(w1.T, Pp, Dp).astype(jnp.bfloat16)
        self.pos = pad2(normal(keys[1], (S, D)), S, Dp)                 # f32

        self.ln_pre_g = pad_vec(jnp.ones((D,), jnp.float32), Dp)
        self.ln_pre_b = pad_vec(jnp.zeros((D,), jnp.float32), Dp)
        self.ln_post_g = pad_vec(jnp.ones((D,), jnp.float32), Dp)
        self.ln_post_b = pad_vec(jnp.zeros((D,), jnp.float32), Dp)

        scale = 1.0 / math.sqrt(float(hd))   # PyTorch MHA q-scaling, folded into Wq/bq

        def layout_qkv_w(w_in):
            # w_in: (3D, D) in_proj_weight (rows: q | k | v).  Columns laid out as
            # [q_h0|...|q_hH-1 | k_h0|... | v_h0|...], each head padded to hdp lanes.
            out = jnp.zeros((Dp, 3 * Hp), jnp.float32)
            for part in range(3):
                Wp = w_in[part * D:(part + 1) * D]                      # (D_out, D_in)
                WpT = Wp.T.reshape(D, heads, hd)                        # (D_in, H, hd)
                if part == 0:
                    WpT = WpT * scale
                blk = jnp.zeros((Dp, heads, hdp), jnp.float32).at[:D, :, :hd].set(WpT)
                out = out.at[:, part * Hp:(part + 1) * Hp].set(blk.reshape(Dp, Hp))
            return out

        def layout_qkv_b(b_in):
            # Bias laid out per-head exactly like the weight columns (q part pre-scaled).
            out = jnp.zeros((1, 3 * Hp), jnp.float32)
            for part in range(3):
                seg = b_in[part * D:(part + 1) * D].reshape(heads, hd)
                if part == 0:
                    seg = seg * scale
                blk = jnp.zeros((heads, hdp), jnp.float32).at[:, :hd].set(seg)
                out = out.at[0, part * Hp:(part + 1) * Hp].set(blk.reshape(-1))
            return out

        def layout_out_w(w_out):
            # out_proj rows follow the padded per-head concat layout; stored as
            # (heads, hdp, Dp) so the kernel indexes one head slab at a time.
            WoT = w_out.T.reshape(heads, hd, D)
            return jnp.zeros((heads, hdp, Dp), jnp.float32).at[:, :hd, :D].set(WoT)

        self.blocks = []
        for l in range(layers):
            k0, k1, k2, k3 = keys[2 + 4 * l: 2 + 4 * (l + 1)]
            w_in = normal(k0, (3 * D, D))     # MHA in_proj_weight
            w_out = normal(k1, (D, D))        # out_proj.weight
            w_fc = normal(k2, (Dm, D))        # mlp.c_fc.weight
            w_pr = normal(k3, (D, Dm))        # mlp.c_proj.weight

            self.blocks.append({
                "ln1_g": pad_vec(jnp.ones((D,), jnp.float32), Dp),
                "ln1_b": pad_vec(jnp.zeros((D,), jnp.float32), Dp),
                "wqkv": layout_qkv_w(w_in).astype(jnp.bfloat16),
                "bqkv": layout_qkv_b(jnp.zeros((3 * D,), jnp.float32)),
                "wo": layout_out_w(w_out).astype(jnp.bfloat16),
                "bo": jnp.zeros((1, Dp), jnp.float32),
                "ln2_g": pad_vec(jnp.ones((D,), jnp.float32), Dp),
                "ln2_b": pad_vec(jnp.zeros((D,), jnp.float32), Dp),
                "wfc": pad2(w_fc.T, Dp, Dmp).astype(jnp.bfloat16),
                "bfc": jnp.zeros((1, Dmp), jnp.float32),
                "wproj": pad2(w_pr.T, Dmp, Dp).astype(jnp.bfloat16),
                "bproj": jnp.zeros((1, Dp), jnp.float32),
            })

    def _pick_batch_block(self, B):
        """Largest TB dividing B whose (double-buffered) footprint fits the VMEM budget."""
        S, Dp, Hp, tdm = self.seq_len, self.Dp, self.Hp, self.tdm

        def vmem_need(tb):
            dbl = 2                                         # BlockSpec double buffering
            io = tb * S * Dp * 2 * dbl * 2                  # bf16 x-in + out blocks
            wq = Dp * 3 * Hp * 2 * dbl                      # resident wqkv (bf16)
            wo = Hp * Dp * 2 * dbl                          # resident wo (bf16)
            slabs = 2 * Dp * tdm * 2 * dbl                  # streamed wfc/wproj slabs
            scr = tb * S * Dp * (4 + 2 + 4) + S * 3 * Hp * 2
            return io + wq + wo + slabs + scr

        tb = 1
        for cand in (8, 4, 2):
            if B % cand == 0 and vmem_need(cand) <= int(_VMEM_LIMIT_BYTES * 0.7):
                tb = cand
                break
        # keep >=2 blocks on the parallel batch axis (megacore / v7x) when possible
        if B // tb < 2 and B >= 4:
            tb = max(1, tb // 2)
        return tb

    def _patchify(self, x):
        # 'b c (hh sh) (ww sw) -> b (hh ww) (c sh sw)'
        B, C, H, W = x.shape
        sh, sw = self.patch_size
        hh, ww = H // sh, W // sw
        x = x.reshape(B, C, hh, sh, ww, sw)
        x = x.transpose(0, 2, 4, 1, 3, 5)
        return x.reshape(B, hh * ww, C * sh * sw)

    def __call__(self, x):
        xp = self._patchify(x).astype(jnp.float32)                      # (B, S, P)
        B, S, _ = xp.shape
        xp_p = jnp.zeros((B, S, self.Pp), jnp.float32).at[:, :, :self.P].set(xp)
        xp_p = xp_p.astype(jnp.bfloat16)

        h = embed_call(xp_p, self.w1, self.pos, self.ln_pre_g, self.ln_pre_b, self.D)

        tb = self._pick_batch_block(B)
        for li, blk in enumerate(self.blocks):
            last = (li == self.layers - 1)
            h = resblock_call(
                h, blk, n_head=self.heads, d_real=self.D, tdm=self.tdm, tb=tb,
                ln_post_g=self.ln_post_g, ln_post_b=self.ln_post_b,
                apply_ln_post=last)                # ln_post fused into last layer
        # strip lane padding, upcast once at the boundary (hidden state stays bf16)
        return h[:, :, :self.D].astype(jnp.float32)


# ----------------------------------- main --------------------------------------

if __name__ == "__main__":
    key = jax.random.PRNGKey(0)
    k_param, k_input = jax.random.split(key)

    model = TransformerEncoderPallas(
        image_size=16, patch_size=4, width=32, layers=2, heads=4, mlp_ratio=4.0,
        key=k_param,
    )

    x = jax.random.normal(k_input, (2, 3, 16, 16), dtype=jnp.float32)
    out = model(x)
    out = jax.block_until_ready(out)
    assert out.shape == (2, 16, 32)
    assert bool(jnp.all(jnp.isfinite(out)))
    print("KERNEL_OK")
</pallas_src>

<mosaic_0001>
module attributes {stable_mosaic.version = 11 : i64} {
  func.func @embed_kernel(%arg0: i32, %arg1: memref<1x16x128xbf16, #tpu.memory_space<vmem>>, %arg2: memref<128x128xbf16, #tpu.memory_space<vmem>>, %arg3: memref<16x128xf32, #tpu.memory_space<vmem>>, %arg4: memref<1x128xf32, #tpu.memory_space<vmem>>, %arg5: memref<1x128xf32, #tpu.memory_space<vmem>>, %arg6: memref<1x16x128xbf16, #tpu.memory_space<vmem>>) attributes {dimension_semantics = [#tpu.dimension_semantics<parallel>], iteration_bounds = array<i64: 2>, scalar_prefetch = 0 : i64, scratch_operands = 0 : i64, tpu.core_type = #tpu.core_type<tc>, window_params = [{transform_indices = @transform_0, window_bounds = array<i64: 1, 16, 128>}, {pipeline_mode = #tpu.pipeline_mode<synchronous>, transform_indices = @transform_1, window_bounds = array<i64: 128, 128>}, {pipeline_mode = #tpu.pipeline_mode<synchronous>, transform_indices = @transform_2, window_bounds = array<i64: 16, 128>}, {pipeline_mode = #tpu.pipeline_mode<synchronous>, transform_indices = @transform_3, window_bounds = array<i64: 1, 128>}, {pipeline_mode = #tpu.pipeline_mode<synchronous>, transform_indices = @transform_4, window_bounds = array<i64: 1, 128>}, {transform_indices = @transform_5, window_bounds = array<i64: 1, 16, 128>}]} {
    %c0 = arith.constant 0 : index
    %c0_0 = arith.constant 0 : index
    %c0_1 = arith.constant 0 : index
    %0 = vector.load %arg1[%c0, %c0_0, %c0_1] : memref<1x16x128xbf16, #tpu.memory_space<vmem>>, vector<1x16x128xbf16>
    %1 = vector.shape_cast %0 : vector<1x16x128xbf16> to vector<16x128xbf16>
    %c0_2 = arith.constant 0 : index
    %c0_3 = arith.constant 0 : index
    %2 = vector.load %arg2[%c0_2, %c0_3] : memref<128x128xbf16, #tpu.memory_space<vmem>>, vector<128x128xbf16>
    %cst = arith.constant dense<0.000000e+00> : vector<16x128xf32>
    %3 = tpu.matmul %1, %2, %cst {dimension_numbers = #tpu.dot_dimension_numbers<[1], [0], [0], [1], [0, 0, 1, 1], [], []>} : vector<16x128xbf16>, vector<128x128xbf16>, vector<16x128xf32> -> vector<16x128xf32>
    %c0_4 = arith.constant 0 : index
    %c0_5 = arith.constant 0 : index
    %4 = vector.load %arg3[%c0_4, %c0_5] : memref<16x128xf32, #tpu.memory_space<vmem>>, vector<16x128xf32>
    %5 = arith.addf %3, %4 : vector<16x128xf32>
    %c0_6 = arith.constant 0 : index
    %c0_7 = arith.constant 0 : index
    %6 = vector.load %arg4[%c0_6, %c0_7] : memref<1x128xf32, #tpu.memory_space<vmem>>, vector<1x128xf32>
    %7 = vector.shape_cast %6 : vector<1x128xf32> to vector<128xf32>
    %c0_8 = arith.constant 0 : index
    %c0_9 = arith.constant 0 : index
    %8 = vector.load %arg5[%c0_8, %c0_9] : memref<1x128xf32, #tpu.memory_space<vmem>>, vector<1x128xf32>
    %9 = vector.shape_cast %8 : vector<1x128xf32> to vector<128xf32>
    %cst_10 = arith.constant dense<0.000000e+00> : vector<16xf32>
    %10 = vector.multi_reduction <add>, %5, %cst_10 [1] : vector<16x128xf32> to vector<16xf32>
    %11 = vector.shape_cast %10 : vector<16xf32> to vector<16x1xf32>
    %cst_11 = arith.constant 3.125000e-02 : f32
    %12 = vector.broadcast %cst_11 : f32 to vector<16x1xf32>
    %13 = arith.mulf %11, %12 : vector<16x1xf32>
    %14 = vector.broadcast %13 : vector<16x1xf32> to vector<16x128xf32>
    %15 = arith.subf %5, %14 : vector<16x128xf32>
    %16 = arith.mulf %15, %15 : vector<16x128xf32>
    %cst_12 = arith.constant dense<0.000000e+00> : vector<16xf32>
    %17 = vector.multi_reduction <add>, %16, %cst_12 [1] : vector<16x128xf32> to vector<16xf32>
    %18 = vector.shape_cast %17 : vector<16xf32> to vector<16x1xf32>
    %cst_13 = arith.constant 9.600000e+01 : f32
    %19 = vector.broadcast %cst_13 : f32 to vector<16x1xf32>
    %20 = arith.mulf %19, %13 : vector<16x1xf32>
    %21 = arith.mulf %20, %13 : vector<16x1xf32>
    %22 = arith.subf %18, %21 : vector<16x1xf32>
    %cst_14 = arith.constant 3.125000e-02 : f32
    %23 = vector.broadcast %cst_14 : f32 to vector<16x1xf32>
    %24 = arith.mulf %22, %23 : vector<16x1xf32>
    %cst_15 = arith.constant 9.99999974E-6 : f32
    %25 = vector.broadcast %cst_15 : f32 to vector<16x1xf32>
    %26 = arith.addf %24, %25 : vector<16x1xf32>
    %27 = math.rsqrt %26 : vector<16x1xf32>
    %28 = vector.broadcast %27 : vector<16x1xf32> to vector<16x128xf32>
    %29 = arith.mulf %15, %28 : vector<16x128xf32>
    %30 = vector.shape_cast %7 : vector<128xf32> to vector<1x128xf32>
    %31 = vector.broadcast %30 : vector<1x128xf32> to vector<16x128xf32>
    %32 = arith.mulf %29, %31 : vector<16x128xf32>
    %33 = vector.shape_cast %9 : vector<128xf32> to vector<1x128xf32>
    %34 = vector.broadcast %33 : vector<1x128xf32> to vector<16x128xf32>
    %35 = arith.addf %32, %34 : vector<16x128xf32>
    %36 = arith.truncf %35 : vector<16x128xf32> to vector<16x128xbf16>
    %c0_16 = arith.constant 0 : index
    %c0_17 = arith.constant 0 : index
    %c0_18 = arith.constant 0 : index
    %37 = vector.load %arg6[%c0_16, %c0_17, %c0_18] : memref<1x16x128xbf16, #tpu.memory_space<vmem>>, vector<1x16x128xbf16>
    %38 = vector.shape_cast %37 : vector<1x16x128xbf16> to vector<16x128xbf16>
    %39 = vector.shape_cast %36 : vector<16x128xbf16> to vector<1x16x128xbf16>
    tpu.vector_store %arg6[%c0_16, %c0_17, %c0_18], %39 {strides = array<i32>} : memref<1x16x128xbf16, #tpu.memory_space<vmem>>, vector<1x16x128xbf16>,
    return
  }
  func.func @transform_0(%arg0: i32) -> (i32, i32, i32) {
    %c0_i32 = arith.constant 0 : i32
    %c0_i32_0 = arith.constant 0 : i32
    %c0_i32_1 = arith.constant 0 : i32
    return %arg0, %c0_i32, %c0_i32_0 : i32, i32, i32
  }
  func.func @transform_1(%arg0: i32) -> (i32, i32) {
    %c0_i32 = arith.constant 0 : i32
    %c0_i32_0 = arith.constant 0 : i32
    %c0_i32_1 = arith.constant 0 : i32
    return %c0_i32, %c0_i32_0 : i32, i32
  }
  func.func @transform_2(%arg0: i32) -> (i32, i32) {
    %c0_i32 = arith.constant 0 : i32
    %c0_i32_0 = arith.constant 0 : i32
    %c0_i32_1 = arith.constant 0 : i32
    return %c0_i32, %c0_i32_0 : i32, i32
  }
  func.func @transform_3(%arg0: i32) -> (i32, i32) {
    %c0_i32 = arith.constant 0 : i32
    %c0_i32_0 = arith.constant 0 : i32
    %c0_i32_1 = arith.constant 0 : i32
    return %c0_i32, %c0_i32_0 : i32, i32
  }
  func.func @transform_4(%arg0: i32) -> (i32, i32) {
    %c0_i32 = arith.constant 0 : i32
    %c0_i32_0 = arith.constant 0 : i32
    %c0_i32_1 = arith.constant 0 : i32
    return %c0_i32, %c0_i32_0 : i32, i32
  }
  func.func @transform_5(%arg0: i32) -> (i32, i32, i32) {
    %c0_i32 = arith.constant 0 : i32
    %c0_i32_0 = arith.constant 0 : i32
    %c0_i32_1 = arith.constant 0 : i32
    return %arg0, %c0_i32, %c0_i32_0 : i32, i32, i32
  }
}

</mosaic_0001>

<bundles_post_ra>
// kernel: tpu_custom_call.1
= control target key start
LH: loop header
LB: loop body
LE: loop exit
PB: predicated region body
PF: predicated region fallthrough
CT: control target
= control target key end

     0   :  { %10 = vsyncpa [#allocation3], 0  ;;  %s1106_s0 = inlined_call_operand.hbm [shape: bf16[2,16,128], index: 0, kind: input, shape index: {}]   ;;  %s1107_s1 = inlined_call_operand.hbm [shape: bf16[128,128], index: 1, kind: input, shape index: {}]   ;;  %s1108_s2 = inlined_call_operand.hbm [shape: f32[16,128], index: 2, kind: input, shape index: {}]   ;;  %s1109_s3 = inlined_call_operand.vmem [shape: f32[1,128], index: 3, kind: input, shape index: {}]   ;;  %s1110_s4 = inlined_call_operand.vmem [shape: f32[1,128], index: 4, kind: input, shape index: {}]   ;;  %s1111_s5 = inlined_call_operand.hbm [shape: bf16[2,16,128], index: 5, kind: output, shape index: {}]  }
   0x1   :  { %12 = vsyncpa [#allocation3 + $0x1], 0 }
   0x2   :  { %13 = vsyncpa [#allocation6], 0 }
   0x3   :  { %14 = vsyncpa [#allocation4], 0 }
   0x4   :  { %16 = vsyncpa [#allocation4 + $0x1], 0  ;;  %s899_s18 = smov 0   ;;  %s901_s19 = smov 0  }
   0x5   :  { %s903_s20 = smov 0   ;;  %s905_s21 = smov 0  }
   0x6 LB: > { %s920_s22 = sadd.s32 4294967295, %s855_s21   ;;  %s550_s23 = sadd.s32 4294967294, %s855_s21   ;;  %s855_s21 = sphi %s905_s21, %s1134_s21   ;;  %s851_s20 = sphi %s903_s20, %s1133_s20   ;;  %s847_s19 = sphi %s901_s19, %s1132_s19   ;;  %s843_s18 = sphi %s899_s18, %s1131_s18  }
   0x7   : > { %p42_p0 = scmp.ne.s32.totalorder %s847_s19, %s843_s18  ;;  %p1112_p1 = scmp.eq.s32.totalorder %s920_s22, 0 }
   0x8   : > { %p150_p2 = scmp.eq.s32.totalorder %s920_s22, 1  ;;  %p156_p3 = scmp.eq.s32.totalorder %s550_s23, 1 }
   0x9   : > { %p929_p4 = por %p1112_p1, %p42_p0  ;;  %p551_p5 = scmp.ge.s32.totalorder %s855_s21, 1 }
   0xa   : > { %p934_p6 = por %p156_p3, %p42_p0  ;;  %p163_p7 = scmp.lt.s32.totalorder %s855_s21, 3 }
   0xb   : > { %s1117_s24 = scalar_select %p929_p4, 1, 0 }
   0xc   : > { %s1118_s25 = scalar_select %p934_p6, 1, 0 }
   0xd   : > { %p939_p8 = pnand %p551_p5, %p163_p7  ;;  %s857_s27 = smov [#allocation5]  }
   0xe   : > { %s175_s28 = sshll.u32 %s857_s27, 4  ;;  %s858_s30 = smov [#allocation7]   ;;  %s176_s28 = int_to_ptr.vmem [resolvable:$true] %s175_s28 }
   0xf   : > { %s1119_s26 = scalar_select %p939_p8, 1, 0 }
  0x10   : > { %p631_p9 = pneg %p939_p8  ;;  %s188_s6 = sshll.u32 %s858_s30, 4  ;;  %s189_s6 = int_to_ptr.vmem [resolvable:$true] %s188_s6 }
  0x11   : > { %s718_s7 = scalar_lea.vmem %s176_s28, 1024  ;;  %p726_p5 = scmp.lt.s32.totalorder %s176_s28, %s176_s28 }
  0x12   : > { %p948_p11 = pnand %p631_p9, %p1112_p1  ;;  %p719_p13 = scmp.ne.s32.totalorder %s176_s28, %s718_s7 }
  0x13   : > { %p727_p7 = scmp.lt.s32.totalorder %s718_s7, %s718_s7 }
  0x14   : > { %p709_p12 = pneg %p948_p11 }
  0x15   : > { %p728_p10 = por %p727_p7, %p726_p5 }
  0x16   : > { %p721_p0 = pnand %p719_p13, %p709_p12 }
  0x18   : > { %p722_p3 = pneg %p721_p0 }
  0x1a   : > { %p729_p9 = pnand %p728_p10, %p722_p3 }
  0x1c   : > { %732 = shalt.err (!%p729_p9)
}
  0x1d   : > { %s1113_s8 = smov 64   ;;  %s860_s9 = smov 4  }
  0x1e   : > { %634 = dma.hbm_to_vmem [thread:$0]  (!%p948_p11), %s1107_s1, 1024, %s176_s28, [#allocation6], %s1113_s8, %s1113_s8, %s860_s9  }
  0x1f   : > { %s744_s12 = scalar_lea.vmem %s189_s6, 256  ;;  %p752_p10 = scmp.lt.s32.totalorder %s189_s6, %s189_s6 }
  0x20   : > { %p745_p13 = scmp.ne.s32.totalorder %s189_s6, %s744_s12  ;;  %p753_p3 = scmp.lt.s32.totalorder %s744_s12, %s744_s12 }
  0x22   : > { %p747_p0 = pnand %p745_p13, %p709_p12  ;;  %p754_p7 = por %p753_p3, %p752_p10 }
  0x24   : > { %p748_p5 = pneg %p747_p0 }
  0x26   : > { %p755_p9 = pnand %p754_p7, %p748_p5 }
  0x28   : > { %758 = shalt.err (!%p755_p9)
}
  0x29   : > { %s861_s13 = smov 128   ;;  %s862_s14 = smov 8  }
  0x2a   : > { %637 = dma.hbm_to_vmem [thread:$0]  (!%p948_p11), %s1108_s2, 256, %s189_s6, [#allocation6], %s861_s13, %s861_s13, %s862_s14  }
  0x2b   : > { %s974_s17 = sadd.s32 1, %s855_s21   ;;  %s29_s27 = sadd.s32 1, %s851_s20 }
  0x2c   : > { %s26_s23 = ssub.s32 %s855_s21, %s974_s17  ;;  %p36_p13 = scmp.ne.s32.totalorder %s851_s20, %s847_s19 }
  0x2d   : > { %p27_p12 = scmp.eq.s32.totalorder %s26_s23, 0  ;;  %p37_p0 = scmp.eq.s32.totalorder %s855_s21, 0 }
  0x2e   : > { %p987_p10 = por %p150_p2, %p36_p13  ;;  %p648_p3 = scmp.lt.s32.totalorder %s855_s21, 2 }
  0x2f   : > { %s983_s28 = scalar_select %p27_p12, %s851_s20, %s29_s27  }
  0x30   : > { %p38_p5 = por %p37_p0, %p36_p13  ;;  %s208_s29 = sand.u32 1, %s851_s20  }
  0x31   : > { %s1121_s30 = scalar_select %p987_p10, 1, 0 }
  0x32   : > { %s555_s7 = sshll.u32 %s208_s29, 3  ;;  %s581_s6 = sshll.u32 %s855_s21, 7 }
  0x33   : > { %s997_s12 = scalar_lea.hbm %s1106_s0, %s581_s6  ;;  %s212_s13 = scalar_lea.vmem [#allocation2], %s555_s7 }
  0x34   : > { %s219_s14 = sshll.u32 %s212_s13, 4  ;;  %p1001_p2 = pnand %p648_p3, %p38_p5  ;;  %s999_s14 = int_to_ptr.vmem [resolvable:$true] %s219_s14 }
  0x35   : > { %s1005_s16 = scalar_lea.sflag [#allocation3], %s208_s29  ;;  %s759_s23 = scalar_lea.hbm %s997_s12, 128 }
  0x36   : > { %p760_p11 = scmp.ne.s32.totalorder %s997_s12, %s759_s23  ;;  %p761_p7 = pneg %p1001_p2 }
  0x37   : > { %s764_s7 = scalar_lea.hbm %s1106_s0, 256  ;;  %p765_p13 = scmp.lt.s32.totalorder %s997_s12, %s1106_s0 }
  0x38   : > { %p762_p9 = pnand %p761_p7, %p760_p11  ;;  %p766_p0 = scmp.lt.s32.totalorder %s764_s7, %s759_s23 }
  0x3a   : > { %p763_p12 = pneg %p762_p9  ;;  %p767_p5 = por %p766_p0, %p765_p13 }
  0x3c   : > { %p768_p3 = pnand %p767_p5, %p763_p12 }
  0x3e   : > { %771 = shalt.err (!%p768_p3)
}
  0x3f   : > { %s772_s29 = scalar_lea.vmem %s999_s14, 128  ;;  %s863_s13 = smov [#allocation2]  }
  0x40   : > { %p773_p1 = scmp.ne.s32.totalorder %s999_s14, %s772_s29  ;;  %s777_s8 = sshll.u32 %s863_s13, 4  ;;  %s778_s8 = int_to_ptr.vmem [resolvable:$false] %s777_s8 }
  0x41   : > { %s779_s27 = scalar_lea.vmem %s778_s8, 256  ;;  %p780_p9 = scmp.lt.s32.totalorder %s999_s14, %s778_s8 }
  0x42   : > { %p775_p6 = pnand %p773_p1, %p761_p7  ;;  %p781_p10 = scmp.lt.s32.totalorder %s779_s27, %s772_s29 }
  0x44   : > { %p776_p11 = pneg %p775_p6  ;;  %p782_p4 = por %p781_p10, %p780_p9 }
  0x46   : > { %p783_p8 = pnand %p782_p4, %p776_p11 }
  0x48   : > { %786 = shalt.err (!%p783_p8)
}
  0x49   : > { %s1123_s23 = smov 64   ;;  %p1124_p1 = scmp.ne.s32.totalorder %s1119_s26, 0 }
  0x4a   : > { %641 = dma.hbm_to_vmem [thread:$0]  (!%p1001_p2), %s997_s12, 128, %s999_s14, %s1005_s16, %s1123_s23, %s1123_s23, %s860_s9  }
  0x4b   : > { %231 = sbr.rel (%p1124_p1) target bundleno = 640 (0x280), region = 40  ;;  %s1032_s6 = sand.u32 (!%p1124_p1), 1, %s847_s19  }
  0x4c   : > { %s559_s8 = sshll.u32 (!%p1124_p1), %s1032_s6, 3  ;;  %s234_s7 = scalar_lea.sflag (!%p1124_p1), [#allocation3], %s1032_s6 }
  0x4d   : > { %s1038_s15 = scalar_lea.vmem (!%p1124_p1), [#allocation2], %s559_s8  ;;  %p1125_p4 = scmp.ne.s32.totalorder (!%p1124_p1), %s1117_s24, 0 }
  0x50   : > { %830 = dma.done.wait (%p1125_p4), %s234_s7, 128  }
  0x51   : > { %832 = vsyncadd (%p1125_p4), %s234_s7, 4294967168  ;;  %p1126_p6 = scmp.eq.s32.totalorder %s920_s22, 0 }
  0x53   : > { %834 = dma.done.wait (%p1126_p6), [#allocation6], 1280   ;;  %p1127_p8 = pmov %p1126_p6 }
  0x54   : > { %v864_v0 = vmov 0.0   ;;  %vm865_vm0 = vmmov 0   ;;  %v694_v1 = vld [vmem:[#allocation5 + $0x38] sm:$0xff]   ;;  %v695_v2 = vld [vmem:[#allocation5 + $0x30] sm:$0xff]   ;;  %v696_v3 = vld [vmem:[#allocation5 + $0x28] sm:$0xff]   ;;  %s584_s14 = sshll.u32 %s920_s22, 7 }
  0x55   : > { %836 = vsyncadd (%p1127_p8), [#allocation6], 4294966016  ;;  %599 = vmatprep.subr.bf16.mxu0 %v864_v0  ;;  %615 = vmatprep.mubr.msk.bf16.mxu0 %vm865_vm0, %v864_v0  ;;  %v697_v4 = vld [vmem:[#allocation5 + $0x20] sm:$0xff]   ;;  %v698_v5 = vld [vmem:[#allocation5 + $0x18] sm:$0xff]   ;;  %s271_s16 = scalar_lea.vmem [#allocation8], %s559_s8  ;;  %s1061_s13 = scalar_lea.hbm %s1111_s5, %s584_s14 }
  0x56   : > { %600 = vmatpush3.bf16.msra.mxu0 %v694_v1  ;;  %v699_v6 = vld [vmem:[#allocation5 + $0x10] sm:$0xff]   ;;  %v700_v7 = vld [vmem:[#allocation5 + $0x8] sm:$0xff]   ;;  %v701_v8 = vld [vmem:[#allocation5] sm:$0xff]   ;;  %s458_s10 = sshll.u32 %s271_s16, 4  ;;  %s445_s27 = scalar_lea.sflag [#allocation4], %s1032_s6  ;;  %s1063_s10 = int_to_ptr.vmem [resolvable:$true] %s458_s10 }
  0x57   : > { %601 = vmatprep.subr.bf16.mxu0 %v864_v0  ;;  %v702_v9 = vld [vmem:[%s1038_s15] sm:$0xff]   ;;  %v291_v10 = vld [vmem:[#allocation7] sm:$0xff]  ;;  %v292_v14 = vld [vmem:[#allocation7 + $0x8] sm:$0xff]  ;;  %s787_s23 = scalar_lea.vmem %s1063_s10, 128  ;;  %p1128_p2 = scmp.ne.s32.totalorder %s1121_s30, 0 }
  0x58   : > { %v572_v40 = vld [vmem:[%s1109_s3] ss:$0 sm:$0xff]  ;;  %p788_p10 = scmp.ne.s32.totalorder %s1063_s10, %s787_s23  ;;  %s866_s22 = smov [#allocation8]  }
  0x59   : > { %v573_v44 = vld [vmem:[%s1110_s4] ss:$0 sm:$0xff]  ;;  %s791_s8 = sshll.u32 %s866_s22, 4  ;;  %s792_s8 = int_to_ptr.vmem [resolvable:$false] %s791_s8 }
  0x5a   : > { %602 = vmatpush3.bf16.msra.mxu0 %v695_v2  ;;  %p789_p7 = pnand %p788_p10, %p1128_p2  ;;  %s793_s7 = scalar_lea.vmem %s792_s8, 256 }
  0x5b   : > { %603 = vmatprep.subr.bf16.mxu0 %v864_v0  ;;  %p794_p13 = scmp.lt.s32.totalorder %s1063_s10, %s792_s8  ;;  %p795_p0 = scmp.lt.s32.totalorder %s793_s7, %s787_s23 }
  0x5c   : > { %p790_p12 = pneg %p789_p7 }
  0x5d   : > { %p796_p5 = por %p795_p0, %p794_p13 }
  0x5e   : > { %604 = vmatpush3.bf16.msra.mxu0 %v696_v3 }
  0x5f   : > { %605 = vmatprep.subr.bf16.mxu0 %v864_v0  ;;  %p797_p3 = pnand %p796_p5, %p790_p12 }
  0x62   : > { %606 = vmatpush3.bf16.msra.mxu0 %v697_v4 }
  0x63   : > { %607 = vmatprep.subr.bf16.mxu0 %v864_v0 }
  0x66   : > { %608 = vmatpush3.bf16.msra.mxu0 %v698_v5 }
  0x67   : > { %609 = vmatprep.subr.bf16.mxu0 %v864_v0 }
  0x6a   : > { %610 = vmatpush3.bf16.msra.mxu0 %v699_v6 }
  0x6b   : > { %611 = vmatprep.subr.bf16.mxu0 %v864_v0 }
  0x6e   : > { %612 = vmatpush3.bf16.msra.mxu0 %v700_v7 }
  0x6f   : > { %613 = vmatprep.subr.bf16.mxu0 %v864_v0 }
  0x72   : > { %614 = vmatpush3.bf16.msra.mxu0 %v701_v8 }
  0x75   : > { %616 = vmatmul.mubr.bf16.vlgmr.msra.gmra.mxu0 %v702_v9 }
 0x135   : > { %v381_v11 = vpop.f32.mrf.mxu0 }
 0x136   : > { %v382_v12 = vadd.f32 %v381_v11, %v291_v10 }
 0x137   : > { %v617_v13 = vpop.f32.mrf.mxu0 }
 0x138   : > { %390 = vadd.xlane.f32.xlu0 %v382_v12 }
 0x139   : > { %v384_v15 = vpop.f32.mrf.mxu0 }
 0x13a   : > { %v385_v16 = vadd.f32 %v384_v15, %v292_v14 }
 0x13b   : > { %v618_v17 = vpop.f32.mrf.mxu0 }
 0x13c   : > { %392 = vadd.xlane.f32.xlu0 %v385_v16 }
 0x1c1   : > { %v391_v18 = vpop.xlane.xlu0 %390 }
 0x1c2   : > { %v394_v19 = vmul.f32 0.03125, %v391_v18 }
 0x1c4   : > { %v396_v20 = vsub.f32 %v382_v12, %v394_v19  ;;  %v404_v26 = vmul.f32 96.0, %v394_v19 }
 0x1c5   : > { %v393_v21 = vpop.xlane.xlu0 %392 }
 0x1c6   : > { %v395_v22 = vmul.f32 0.03125, %v393_v21  ;;  %v398_v23 = vmul.f32 %v396_v20, %v396_v20  ;;  %v406_v28 = vmul.f32 %v404_v26, %v394_v19 }
 0x1c8   : > { %400 = vadd.xlane.f32.xlu1 %v398_v23  ;;  %v397_v24 = vsub.f32 %v385_v16, %v395_v22  ;;  %v405_v27 = vmul.f32 96.0, %v395_v22 }
 0x1ca   : > { %v399_v25 = vmul.f32 %v397_v24, %v397_v24  ;;  %v407_v32 = vmul.f32 %v405_v27, %v395_v22 }
 0x1cc   : > { %402 = vadd.xlane.f32.xlu1 %v399_v25 }
 0x251   : > { %v401_v29 = vpop.xlane.xlu1 %400 }
 0x252   : > { %v408_v30 = vsub.f32 %v401_v29, %v406_v28 }
 0x254   : > { %v410_v31 = vmul.f32 0.03125, %v408_v30 }
 0x255   : > { %v403_v33 = vpop.xlane.xlu1 %402 }
 0x256   : > { %v412_v34 = vadd.f32 1e-05, %v410_v31  ;;  %v409_v35 = vsub.f32 %v403_v33, %v407_v32 }
 0x258   : > { %703 = vrsqrt.f32 %v412_v34  ;;  %v411_v36 = vmul.f32 0.03125, %v409_v35 }
 0x25a   : > { %v413_v37 = vadd.f32 1e-05, %v411_v36 }
 0x25c   : > { %705 = vrsqrt.f32 %v413_v37 }
 0x265   : > { %v704_v38 = vpop.eup %703 }
 0x266   : > { %v416_v39 = vmul.f32 %v704_v38, %v396_v20 }
 0x268   : > { %v424_v42 = vmul.f32 %v572_v40, %v416_v39 }
 0x269   : > { %v706_v41 = vpop.eup %705 }
 0x26a   : > { %v417_v43 = vmul.f32 %v706_v41, %v397_v24  ;;  %v432_v46 = vadd.f32 %v573_v44, %v424_v42 }
 0x26c   : > { %v425_v45 = vmul.f32 %v572_v40, %v417_v43 }
 0x26e   : > { %v433_v47 = vadd.f32 %v573_v44, %v425_v45 }
 0x270   : > { %v588_v48 = vpack.c.bf16 %v433_v47, %v432_v46 }
 0x272   : > { %589 = vst [vmem:[%s271_s16] sm:$0xff] %v588_v48  }
 0x273   : > { %800 = shalt.err (!%p797_p3)
}
 0x274   : > { %s801_s15 = scalar_lea.hbm %s1061_s13, 128  ;;  %s805_s9 = scalar_lea.hbm %s1111_s5, 256 }
 0x275   : > { %p802_p11 = scmp.ne.s32.totalorder %s1061_s13, %s801_s15  ;;  %p806_p4 = scmp.lt.s32.totalorder %s1061_s13, %s1111_s5 }
 0x276   : > { %p807_p6 = scmp.lt.s32.totalorder %s805_s9, %s801_s15 }
 0x277   : > { %p803_p9 = pnand %p802_p11, %p1128_p2 }
 0x278   : > { %p808_p8 = por %p807_p6, %p806_p4 }
 0x279   : > { %p804_p1 = pneg %p803_p9 }
 0x27b   : > { %p809_p10 = pnand %p808_p8, %p804_p1 }
 0x27d   : > { %812 = shalt.err (!%p809_p10)
}
 0x27e   : > { %s867_s16 = smov 64   ;;  %s868_s11 = smov 4  }
 0x27f   : > { %629 = dma.vmem_to_hbm [thread:$0]  (%p1128_p2), %s1063_s10, 128, %s1061_s13, %s445_s27, %s867_s16, %s867_s16, %s868_s11  }
 0x280 PF: > { %s473_s29 = sand.u32 1, %s843_s18   ;;  %p1129_p7 = scmp.ne.s32.totalorder %s1118_s25, 0 }
 0x281   : > { %p1130_p12 = scmp.ge.s32.totalorder %s855_s21, 2  ;;  %s474_s23 = scalar_lea.sflag [#allocation4], %s473_s29 }
 0x283   : > { %p643_p13 = pnand %p1130_p12, %p1129_p7 }
 0x285   : > { %p644_p0 = pneg %p643_p13 }
 0x287   : > { %838 = dma.done.wait (%p644_p0), %s474_s23, 128  }
 0x288   : > { %840 = vsyncadd (%p644_p0), %s474_s23, 4294967168  ;;  %p19_p5 = scmp.ge.s32.totalorder %s974_s17, 4   ;;  %s1131_s18 = smov %s847_s19 }
 0x289   : > { %s1132_s19 = smov %s851_s20  ;;  %s1133_s20 = smov %s983_s28 }
 0x28a   : > { %s1134_s21 = smov %s974_s17  ;;  %21 = sbr.rel (!%p19_p5) target bundleno = 6 (0x6), region = 93 }
 0x28f   :  { %479 = vsyncpa [#allocation3], 1 }
 0x290   :  { %481 = vsyncpa [#allocation3 + $0x1], 1 }
 0x291   :  { %482 = vsyncpa [#allocation6], 1 }
 0x292   :  { %483 = vsyncpa [#allocation4], 1 }
 0x293   :  { %485 = vsyncpa [#allocation4 + $0x1], 1 }

</bundles_post_ra>
